<compile_context>
chip_gen: v5e
topology: v5e:2x2
jax: 0.10.0
libtpu: 0.0.40
codegen_flags: <defaults>
</compile_context>

<pallas_src>
import jax
import jax.numpy as jnp
from jax.experimental import pallas as pl
from jax.experimental.pallas import tpu as pltpu

LANE = 128
TILE_B_MAX = 2048          # rows of x per grid step

H1, H2, N_OUT = 40, 10, 1  # Critic hidden sizes from the PyTorch module
H1P = 128                  # 40 padded to lane width
H2P = 128                  # 10 padded to lane width


def _round_up(x, m):
    return ((x + m - 1) // m) * m


def critic_kernel(x_ref, w1_ref, b1_ref, w2_ref, b2_ref, w3_ref, b3_ref, o_ref):
    hp = jax.lax.Precision.HIGHEST
    # fc1 + ReLU   (MXU: (tile_b, n_in) @ (n_in, 128))
    h1 = jnp.dot(x_ref[...], w1_ref[...],
                 preferred_element_type=jnp.float32, precision=hp)
    h1 = jnp.maximum(h1 + b1_ref[...], 0.0)
    # fc2 + ReLU   (MXU: (tile_b, 128) @ (128, 128))
    h2 = jnp.dot(h1, w2_ref[...],
                 preferred_element_type=jnp.float32, precision=hp)
    h2 = jnp.maximum(h2 + b2_ref[...], 0.0)
    # state_value (10 -> 1), emitted lane-dense:
    #   (1, 128) . (tile_b, 128)^T -> (1, tile_b)   (same pattern as q @ k^T)
    v = jax.lax.dot_general(w3_ref[...], h2,
                            dimension_numbers=(((1,), (1,)), ((), ())),
                            preferred_element_type=jnp.float32, precision=hp)
    o_ref[...] = (v + b3_ref[...]).astype(o_ref.dtype)


def pad_params(params):
    """One-time conversion of (in, out)-layout params into TPU lane-padded tiles.
    Call once; reuse the result for every forward."""
    w1, b1, w2, b2, w3, b3 = params
    n_in = w1.shape[0]
    w1p = jnp.zeros((n_in, H1P), jnp.float32).at[:, :H1].set(w1)
    b1p = jnp.zeros((1, H1P), jnp.float32).at[0, :H1].set(b1)
    w2p = jnp.zeros((H1P, H2P), jnp.float32).at[:H1, :H2].set(w2)
    b2p = jnp.zeros((1, H2P), jnp.float32).at[0, :H2].set(b2)
    # state_value weight stored as a single (1, 128) row for the transposed-rhs dot.
    w3p = jnp.zeros((1, H2P), jnp.float32).at[0, :H2].set(w3[:, 0])
    b3p = jnp.reshape(b3.astype(jnp.float32), (1, 1))
    return (w1p, b1p, w2p, b2p, w3p, b3p)


def _choose_tile(B):
    """Pick (tile_b, num_tiles).

    - B <= 128: one exact block (block dim == full array dim is always legal, so an
      odd B needs no padding and no masking).
    - B  > 128: lane-aligned tiles (tile_b is also the lane width of the (1, tile_b)
      output block, so it must be a multiple of 128), and at least two of them so a
      v7x megacore can split the "parallel" batch axis over both TensorCores.
    """
    if B <= LANE:
        return B, 1
    tile_b = min(TILE_B_MAX, _round_up(pl.cdiv(B, 2), LANE))
    return tile_b, pl.cdiv(B, tile_b)


@jax.jit
def critic_forward(x, padded_params):
    """x: (B, numberOfInputs) -> (B, 1) float32."""
    w1p, b1p, w2p, b2p, w3p, b3p = padded_params
    B, n_in = x.shape
    tile_b, num_tiles = _choose_tile(B)
    bp = num_tiles * tile_b          # lane extent of the raw (1, bp) output row

    const = lambda i: (0, 0)
    weight_bytes = (n_in * H1P + H1P + H1P * H2P + H2P + H2P + 1) * 4

    out_row = pl.pallas_call(
        critic_kernel,
        out_shape=jax.ShapeDtypeStruct((1, bp), jnp.float32),
        grid=(num_tiles,),
        in_specs=[
            pl.BlockSpec((tile_b, n_in), lambda i: (i, 0)),  # x streams per tile
            pl.BlockSpec((n_in, H1P), const),                # weights stay resident
            pl.BlockSpec((1, H1P), const),
            pl.BlockSpec((H1P, H2P), const),
            pl.BlockSpec((1, H2P), const),
            pl.BlockSpec((1, H2P), const),
            pl.BlockSpec((1, 1), const),
        ],
        out_specs=pl.BlockSpec((1, tile_b), lambda i: (0, i)),  # lane-dense row
        compiler_params=pltpu.CompilerParams(
            dimension_semantics=("parallel",),
            vmem_limit_bytes=32 * 1024 * 1024),
        cost_estimate=pl.CostEstimate(
            flops=2 * bp * (n_in * H1 + H1 * H2 + H2 * N_OUT),
            transcendentals=0,
            bytes_accessed=bp * n_in * x.dtype.itemsize + bp * 4 + weight_bytes),
    )(x, w1p, b1p, w2p, b2p, w3p, b3p)

    # (1, bp) row -> (B, 1) column; the reshape is layout-free (same linearization).
    return out_row[:, :B].reshape(B, 1)


def init_critic_params(key, number_of_inputs):
    """Deterministic init mimicking torch.nn.Linear default (uniform +-1/sqrt(fan_in)).
    Weights stored as (in, out) so forward is x @ W + b."""
    dims = [(number_of_inputs, H1), (H1, H2), (H2, N_OUT)]
    params = []
    for i, (fan_in, fan_out) in enumerate(dims):
        kw, kb = jax.random.split(jax.random.fold_in(key, i))
        bound = 1.0 / jnp.sqrt(fan_in)
        w = jax.random.uniform(kw, (fan_in, fan_out), jnp.float32, -bound, bound)
        b = jax.random.uniform(kb, (fan_out,), jnp.float32, -bound, bound)
        params += [w, b]
    return tuple(params)


def critic_reference(x, params):
    w1, b1, w2, b2, w3, b3 = params
    hp = jax.lax.Precision.HIGHEST
    h = jnp.maximum(jnp.dot(x, w1, precision=hp) + b1, 0.0)
    h = jnp.maximum(jnp.dot(h, w2, precision=hp) + b2, 0.0)
    return jnp.dot(h, w3, precision=hp) + b3


if __name__ == "__main__":
    key = jax.random.PRNGKey(0)
    number_of_inputs = 32
    batch = 2

    params = init_critic_params(jax.random.fold_in(key, 123), number_of_inputs)
    padded = pad_params(params)  # pad once, reuse for every forward
    x = jax.random.normal(jax.random.fold_in(key, 7),
                          (batch, number_of_inputs), jnp.float32)

    out = critic_forward(x, padded)
    jax.block_until_ready(out)

    ref = critic_reference(x, params)
    assert out.shape == (batch, 1), out.shape
    assert jnp.allclose(out, ref, atol=1e-5, rtol=1e-5), (out, ref)

    print("KERNEL_OK")
</pallas_src>

<mosaic_0001>
module attributes {stable_mosaic.version = 11 : i64} {
  func.func @critic_kernel(%arg0: i32, %arg1: memref<2x32xf32, #tpu.memory_space<vmem>>, %arg2: memref<32x128xf32, #tpu.memory_space<vmem>>, %arg3: memref<1x128xf32, #tpu.memory_space<vmem>>, %arg4: memref<128x128xf32, #tpu.memory_space<vmem>>, %arg5: memref<1x128xf32, #tpu.memory_space<vmem>>, %arg6: memref<1x128xf32, #tpu.memory_space<vmem>>, %arg7: memref<1x1xf32, #tpu.memory_space<vmem>>, %arg8: memref<1x2xf32, #tpu.memory_space<vmem>>) attributes {dimension_semantics = [#tpu.dimension_semantics<parallel>], iteration_bounds = array<i64: 1>, scalar_prefetch = 0 : i64, scratch_operands = 0 : i64, tpu.core_type = #tpu.core_type<tc>, window_params = [{transform_indices = @transform_0, window_bounds = array<i64: 2, 32>}, {pipeline_mode = #tpu.pipeline_mode<synchronous>, transform_indices = @transform_1, window_bounds = array<i64: 32, 128>}, {pipeline_mode = #tpu.pipeline_mode<synchronous>, transform_indices = @transform_2, window_bounds = array<i64: 1, 128>}, {pipeline_mode = #tpu.pipeline_mode<synchronous>, transform_indices = @transform_3, window_bounds = array<i64: 128, 128>}, {pipeline_mode = #tpu.pipeline_mode<synchronous>, transform_indices = @transform_4, window_bounds = array<i64: 1, 128>}, {pipeline_mode = #tpu.pipeline_mode<synchronous>, transform_indices = @transform_5, window_bounds = array<i64: 1, 128>}, {pipeline_mode = #tpu.pipeline_mode<synchronous>, transform_indices = @transform_6, window_bounds = array<i64: 1, 1>}, {transform_indices = @transform_7, window_bounds = array<i64: 1, 2>}]} {
    %c0 = arith.constant 0 : index
    %c0_0 = arith.constant 0 : index
    %0 = vector.load %arg1[%c0, %c0_0] : memref<2x32xf32, #tpu.memory_space<vmem>>, vector<2x32xf32>
    %c0_1 = arith.constant 0 : index
    %c0_2 = arith.constant 0 : index
    %1 = vector.load %arg2[%c0_1, %c0_2] : memref<32x128xf32, #tpu.memory_space<vmem>>, vector<32x128xf32>
    %cst = arith.constant dense<0.000000e+00> : vector<2x128xf32>
    %2 = tpu.matmul %0, %1, %cst {dimension_numbers = #tpu.dot_dimension_numbers<[1], [0], [0], [1], [0, 0, 1, 1], [], []>, precision = #tpu.contract_precision<fp32>} : vector<2x32xf32>, vector<32x128xf32>, vector<2x128xf32> -> vector<2x128xf32>
    %c0_3 = arith.constant 0 : index
    %c0_4 = arith.constant 0 : index
    %3 = vector.load %arg3[%c0_3, %c0_4] : memref<1x128xf32, #tpu.memory_space<vmem>>, vector<1x128xf32>
    %4 = vector.broadcast %3 : vector<1x128xf32> to vector<2x128xf32>
    %5 = arith.addf %2, %4 : vector<2x128xf32>
    %cst_5 = arith.constant 0.000000e+00 : f32
    %6 = vector.broadcast %cst_5 : f32 to vector<2x128xf32>
    %7 = arith.maximumf %5, %6 : vector<2x128xf32>
    %c0_6 = arith.constant 0 : index
    %c0_7 = arith.constant 0 : index
    %8 = vector.load %arg4[%c0_6, %c0_7] : memref<128x128xf32, #tpu.memory_space<vmem>>, vector<128x128xf32>
    %cst_8 = arith.constant dense<0.000000e+00> : vector<2x128xf32>
    %9 = tpu.matmul %7, %8, %cst_8 {dimension_numbers = #tpu.dot_dimension_numbers<[1], [0], [0], [1], [0, 0, 1, 1], [], []>, precision = #tpu.contract_precision<fp32>} : vector<2x128xf32>, vector<128x128xf32>, vector<2x128xf32> -> vector<2x128xf32>
    %c0_9 = arith.constant 0 : index
    %c0_10 = arith.constant 0 : index
    %10 = vector.load %arg5[%c0_9, %c0_10] : memref<1x128xf32, #tpu.memory_space<vmem>>, vector<1x128xf32>
    %11 = vector.broadcast %10 : vector<1x128xf32> to vector<2x128xf32>
    %12 = arith.addf %9, %11 : vector<2x128xf32>
    %cst_11 = arith.constant 0.000000e+00 : f32
    %13 = vector.broadcast %cst_11 : f32 to vector<2x128xf32>
    %14 = arith.maximumf %12, %13 : vector<2x128xf32>
    %c0_12 = arith.constant 0 : index
    %c0_13 = arith.constant 0 : index
    %15 = vector.load %arg6[%c0_12, %c0_13] : memref<1x128xf32, #tpu.memory_space<vmem>>, vector<1x128xf32>
    %cst_14 = arith.constant dense<0.000000e+00> : vector<1x2xf32>
    %16 = tpu.matmul %15, %14, %cst_14 {dimension_numbers = #tpu.dot_dimension_numbers<[1], [1], [0], [0], [0, 0, 1, 0], [], []>, precision = #tpu.contract_precision<fp32>} : vector<1x128xf32>, vector<2x128xf32>, vector<1x2xf32> -> vector<1x2xf32>
    %c0_15 = arith.constant 0 : index
    %c0_16 = arith.constant 0 : index
    %17 = vector.load %arg7[%c0_15, %c0_16] : memref<1x1xf32, #tpu.memory_space<vmem>>, vector<1x1xf32>
    %18 = vector.broadcast %17 : vector<1x1xf32> to vector<1x2xf32>
    %19 = arith.addf %16, %18 : vector<1x2xf32>
    %c0_17 = arith.constant 0 : index
    %c0_18 = arith.constant 0 : index
    %20 = vector.load %arg8[%c0_17, %c0_18] : memref<1x2xf32, #tpu.memory_space<vmem>>, vector<1x2xf32>
    tpu.vector_store %arg8[%c0_17, %c0_18], %19 {strides = array<i32>} : memref<1x2xf32, #tpu.memory_space<vmem>>, vector<1x2xf32>,
    return
  }
  func.func @transform_0(%arg0: i32) -> (i32, i32) {
    %c0_i32 = arith.constant 0 : i32
    %c0_i32_0 = arith.constant 0 : i32
    return %arg0, %c0_i32 : i32, i32
  }
  func.func @transform_1(%arg0: i32) -> (i32, i32) {
    %c0_i32 = arith.constant 0 : i32
    %c0_i32_0 = arith.constant 0 : i32
    %c0_i32_1 = arith.constant 0 : i32
    return %c0_i32, %c0_i32_0 : i32, i32
  }
  func.func @transform_2(%arg0: i32) -> (i32, i32) {
    %c0_i32 = arith.constant 0 : i32
    %c0_i32_0 = arith.constant 0 : i32
    %c0_i32_1 = arith.constant 0 : i32
    return %c0_i32, %c0_i32_0 : i32, i32
  }
  func.func @transform_3(%arg0: i32) -> (i32, i32) {
    %c0_i32 = arith.constant 0 : i32
    %c0_i32_0 = arith.constant 0 : i32
    %c0_i32_1 = arith.constant 0 : i32
    return %c0_i32, %c0_i32_0 : i32, i32
  }
  func.func @transform_4(%arg0: i32) -> (i32, i32) {
    %c0_i32 = arith.constant 0 : i32
    %c0_i32_0 = arith.constant 0 : i32
    %c0_i32_1 = arith.constant 0 : i32
    return %c0_i32, %c0_i32_0 : i32, i32
  }
  func.func @transform_5(%arg0: i32) -> (i32, i32) {
    %c0_i32 = arith.constant 0 : i32
    %c0_i32_0 = arith.constant 0 : i32
    %c0_i32_1 = arith.constant 0 : i32
    return %c0_i32, %c0_i32_0 : i32, i32
  }
  func.func @transform_6(%arg0: i32) -> (i32, i32) {
    %c0_i32 = arith.constant 0 : i32
    %c0_i32_0 = arith.constant 0 : i32
    %c0_i32_1 = arith.constant 0 : i32
    return %c0_i32, %c0_i32_0 : i32, i32
  }
  func.func @transform_7(%arg0: i32) -> (i32, i32) {
    %c0_i32 = arith.constant 0 : i32
    %c0_i32_0 = arith.constant 0 : i32
    return %c0_i32, %arg0 : i32, i32
  }
}

</mosaic_0001>

<bundles_post_ra>
// kernel: critic_forward.1
= control target key start
LH: loop header
LB: loop body
LE: loop exit
PB: predicated region body
PF: predicated region fallthrough
CT: control target
= control target key end

     0   :  { %s1246_s0 = inlined_call_operand.vmem [shape: f32[2,32], index: 0, kind: input, shape index: {}]   ;;  %s1247_s1 = inlined_call_operand.hbm [shape: f32[32,128], index: 1, kind: input, shape index: {}]   ;;  %s1248_s2 = inlined_call_operand.vmem [shape: f32[1,128], index: 2, kind: input, shape index: {}]   ;;  %s1249_s3 = inlined_call_operand.hbm [shape: f32[128,128], index: 3, kind: input, shape index: {}]   ;;  %s1250_s4 = inlined_call_operand.vmem [shape: f32[1,128], index: 4, kind: input, shape index: {}]   ;;  %s1251_s5 = inlined_call_operand.vmem [shape: f32[1,128], index: 5, kind: input, shape index: {}]   ;;  %s1252_s6 = inlined_call_operand.<no memory space> [shape: f32[1,1], index: 6, kind: input, shape index: {}]   ;;  %s1253_s7 = inlined_call_operand.hbm [shape: f32[1,2], index: 7, kind: output, shape index: {}]  }
   0x1   :  { %v12_v0 = vstv %s1252_s6 }
   0x2   :  { %13 = vst [vmem:[#allocation2] sm:$0x1] %v12_v0 }
   0x3   :  { %14 = vsyncpa [#allocation4], 0 }
   0x4   :  { %15 = vsyncpa [#allocation7], 0 }
   0x5   :  { %16 = vsyncpa [#allocation5], 0  ;;  %s23_s28 = sshll.u32 %s1247_s1, 4  ;;  %s883_s29 = smov [#allocation3]   ;;  %s24_s28 = int_to_ptr.hbm [resolvable:$true] %s23_s28 }
   0x6   :  { %s25_s30 = sshll.u32 %s883_s29, 4  ;;  %s38_s10 = sshll.u32 %s1249_s3, 4  ;;  %s26_s30 = int_to_ptr.vmem [resolvable:$true] %s25_s30  ;;  %s39_s10 = int_to_ptr.hbm [resolvable:$true] %s38_s10 }
   0x7   :  { %s884_s11 = smov 128   ;;  %s885_s12 = smov 8  }
   0x8   :  { %31 = dma.hbm_to_vmem [thread:$0]  %s24_s28, 512, %s26_s30, [#allocation4], %s884_s11, %s884_s11, %s885_s12  }
   0x9   :  { %s886_s6 = smov [#allocation6]  }
   0xa   :  { %s40_s13 = sshll.u32 %s886_s6, 4  ;;  %s41_s13 = int_to_ptr.vmem [resolvable:$true] %s40_s13 }
   0xb   :  { %46 = dma.hbm_to_vmem [thread:$0]  %s39_s10, 2048, %s41_s13, [#allocation7], %s884_s11, %s884_s11, %s885_s12  }
   0xc   :  { %877 = dma.done.wait [#allocation4], 512  }
   0xd   :  { %878 = vsyncadd [#allocation4], 4294966784 }
   0xe   :  { %879 = dma.done.wait [#allocation7], 2048  }
   0xf   :  { %880 = vsyncadd [#allocation7], 4294965248  ;;  %vm70_vm0 = vcmask 261120   ;;  %v65_v1 = vld [vmem:[#allocation3 + $0x18] sm:$0xff]  ;;  %v64_v2 = vld [vmem:[#allocation3 + $0x10] sm:$0xff]  ;;  %s785_s20 = sshll.u32 %s1253_s7, 4  ;;  %s786_s20 = int_to_ptr.hbm [resolvable:$true] %s785_s20 }
  0x10   :  { %v63_v3 = vld [vmem:[#allocation3 + $0x8] sm:$0xff]  ;;  %v938_v4 = vand.u32 4294901760, %v65_v1  ;;  %v940_v5 = vand.u32 4294901760, %v64_v2  ;;  %v62_v7 = vld [vmem:[#allocation3] sm:$0xff]  ;;  %v275_v11 = vld [vmem:[#allocation6 + $0x78] sm:$0xff]  ;;  %vm776_vm1 = vcmask 8192  }
  0x11   :  { %v942_v6 = vand.u32 4294901760, %v63_v3  ;;  %v61_v8 = vld [vmem:[%s1246_s0] sm:$0x3]  ;;  %v947_v9 = vand.u32 4294901760, %v62_v7  ;;  %v274_v12 = vld [vmem:[#allocation6 + $0x70] sm:$0xff]  ;;  %v273_v13 = vld [vmem:[#allocation6 + $0x68] sm:$0xff] }
  0x12   :  { %v72_v10 = vsel %vm70_vm0, %v61_v8, 0  ;;  %v116_v14 = vsub.f32 %v65_v1, %v938_v4  ;;  %87 = vmatpush.msra.mxu0 %v938_v4  ;;  %v952_v15 = vsub.f32 %v64_v2, %v940_v5  ;;  %187 = vmatpush.msra.mxu3 %v938_v4  ;;  %v963_v19 = vand.u32 4294901760, %v275_v11  ;;  %v272_v38 = vld [vmem:[#allocation6 + $0x60] sm:$0xff]  ;;  %v271_v39 = vld [vmem:[#allocation6 + $0x58] sm:$0xff]  ;;  %v270_v40 = vld [vmem:[#allocation6 + $0x50] sm:$0xff] }
  0x13   :  { %v956_v16 = vsub.f32 %v63_v3, %v942_v6  ;;  %v958_v17 = vand.u32 4294901760, %v72_v10  ;;  %v961_v18 = vsub.f32 %v62_v7, %v947_v9  ;;  %v965_v20 = vand.u32 4294901760, %v274_v12  ;;  %v269_v45 = vld [vmem:[#allocation6 + $0x48] sm:$0xff]  ;;  %v268_v50 = vld [vmem:[#allocation6 + $0x40] sm:$0xff]  ;;  %v267_v51 = vld [vmem:[#allocation6 + $0x38] sm:$0xff] }
  0x14   :  { %v967_v21 = vand.u32 4294901760, %v273_v13  ;;  %158 = vmatpush.msra.mxu2 %v116_v14  ;;  %89 = vmatpush.msra.mxu0 %v940_v5  ;;  %v117_v22 = vand.u32 4294901760, %v116_v14  ;;  %v123_v23 = vand.u32 4294901760, %v952_v15  ;;  %v976_v27 = vsub.f32 %v275_v11, %v963_v19  ;;  %v266_v56 = vld [vmem:[#allocation6 + $0x30] sm:$0xff]  ;;  %v265_v57 = vld [vmem:[#allocation6 + $0x28] sm:$0xff] }
  0x15   :  { %v95_v24 = vsub.f32 %v72_v10, %v958_v17  ;;  %v129_v25 = vand.u32 4294901760, %v956_v16  ;;  %189 = vmatpush.msra.mxu3 %v940_v5  ;;  %v135_v26 = vand.u32 4294901760, %v961_v18  ;;  %v979_v28 = vsub.f32 %v274_v12, %v965_v20 }
  0x16   :  { %v982_v29 = vsub.f32 %v273_v13, %v967_v21  ;;  %161 = vmatpush.msra.mxu2 %v952_v15  ;;  %v118_v30 = vsub.f32 %v116_v14, %v117_v22  ;;  %91 = vmatpush.msra.mxu0 %v942_v6  ;;  %v124_v31 = vsub.f32 %v952_v15, %v123_v23  ;;  %v323_v35 = vand.u32 4294901760, %v976_v27 }
  0x17   :  { %v130_v32 = vsub.f32 %v956_v16, %v129_v25  ;;  %v96_v33 = vand.u32 4294901760, %v95_v24  ;;  %191 = vmatpush.msra.mxu3 %v942_v6  ;;  %v136_v34 = vsub.f32 %v961_v18, %v135_v26  ;;  %v329_v36 = vand.u32 4294901760, %v979_v28 }
  0x18   :  { %v335_v37 = vand.u32 4294901760, %v982_v29  ;;  %v119_v41 = vand.u32 4294901760, %v118_v30  ;;  %164 = vmatpush.msra.mxu2 %v956_v16  ;;  %v125_v42 = vand.u32 4294901760, %v124_v31  ;;  %93 = vmatpush.msra.mxu0 %v947_v9  ;;  %v324_v47 = vsub.f32 %v976_v27, %v323_v35  ;;  %v264_v30 = vld [vmem:[#allocation6 + $0x20] sm:$0xff]  ;;  %v263_v31 = vld [vmem:[#allocation6 + $0x18] sm:$0xff] }
  0x19   :  { %v131_v43 = vand.u32 4294901760, %v130_v32  ;;  %v97_v44 = vsub.f32 %v95_v24, %v96_v33  ;;  %193 = vmatpush.msra.mxu3 %v947_v9  ;;  %v137_v46 = vand.u32 4294901760, %v136_v34  ;;  %v330_v48 = vsub.f32 %v979_v28, %v329_v36  ;;  %v262_v34 = vld [vmem:[#allocation6 + $0x10] sm:$0xff] }
  0x1a   :  { %216 = vmatpush.msrb.mxu0 %v117_v22  ;;  %v336_v49 = vsub.f32 %v982_v29, %v335_v37  ;;  %120 = vmatpush.msra.mxu1 %v119_v41  ;;  %v1010_v53 = vand.u32 4294901760, %v272_v38  ;;  %v1012_v54 = vand.u32 4294901760, %v271_v39  ;;  %v1014_v55 = vand.u32 4294901760, %v270_v40  ;;  %v261_v41 = vld [vmem:[#allocation6 + $0x8] sm:$0xff] }
  0x1b   :  { %167 = vmatpush.msra.mxu2 %v961_v18  ;;  %v98_v52 = vand.u32 4294901760, %v97_v44  ;;  %197 = vmatmul.f32.vlgmr.msra.gmra.mxu3 %v96_v33  ;;  %v325_v58 = vand.u32 4294901760, %v324_v47  ;;  %v331_v59 = vand.u32 4294901760, %v330_v48  ;;  %v1016_v61 = vand.u32 4294901760, %v269_v45 }
  0x1c   :  { %170 = vmatmul.f32.vlgmr.msra.gmra.mxu2 %v95_v24  ;;  %v337_v60 = vand.u32 4294901760, %v336_v49  ;;  %126 = vmatpush.msra.mxu1 %v125_v42  ;;  %v1019_v62 = vsub.f32 %v272_v38, %v1010_v53  ;;  %v1022_v63 = vsub.f32 %v271_v39, %v1012_v54  ;;  %v1025_v0 = vsub.f32 %v270_v40, %v1014_v55 }
  0x1d   :  { %99 = vmatmul.f32.vlgmr.msra.gmra.mxu0 %v98_v52  ;;  %v1027_v1 = vand.u32 4294901760, %v268_v50  ;;  %326 = vmatpush.msrb.mxu3 %v325_v58  ;;  %v1030_v2 = vsub.f32 %v269_v45, %v1016_v61  ;;  %v1032_v3 = vand.u32 4294901760, %v267_v51  ;;  %v1034_v7 = vand.u32 4294901760, %v266_v56 }
  0x1e   :  { %220 = vmatpush.msrb.mxu0 %v123_v23  ;;  %v1036_v8 = vand.u32 4294901760, %v265_v57  ;;  %132 = vmatpush.msra.mxu1 %v131_v43  ;;  %v341_v10 = vand.u32 4294901760, %v1019_v62  ;;  %v347_v11 = vand.u32 4294901760, %v1022_v63  ;;  %v353_v12 = vand.u32 4294901760, %v1025_v0 }
  0x1f   :  { %281 = vmatpush.msrb.mxu2 %v963_v19  ;;  %v1043_v13 = vsub.f32 %v268_v50, %v1027_v1  ;;  %332 = vmatpush.msrb.mxu3 %v331_v59  ;;  %v359_v14 = vand.u32 4294901760, %v1030_v2  ;;  %v1049_v15 = vsub.f32 %v267_v51, %v1032_v3  ;;  %v1059_v16 = vsub.f32 %v266_v56, %v1034_v7 }
  0x20   :  { %224 = vmatpush.msrb.mxu0 %v129_v25  ;;  %138 = vmatpush.msra.mxu1 %v137_v46  ;;  %v342_v22 = vsub.f32 %v1019_v62, %v341_v10  ;;  %v348_v23 = vsub.f32 %v1022_v63, %v347_v11  ;;  %v354_v24 = vsub.f32 %v1025_v0, %v353_v12  ;;  %v1081_v39 = vand.u32 4294901760, %v264_v30  ;;  %v260_v46 = vld [vmem:[#allocation6] sm:$0xff] }
  0x21   :  { %283 = vmatpush.msrb.mxu2 %v965_v20  ;;  %140 = vmatmul.f32.vlgmr.msra.gmra.mxu1 %v958_v17  ;;  %v365_v25 = vand.u32 4294901760, %v1043_v13  ;;  %v1070_v33 = vsub.f32 %v265_v57, %v1036_v8  ;;  %v360_v18 = vsub.f32 %v1030_v2, %v359_v14  ;;  %v1083_v40 = vand.u32 4294901760, %v263_v31 }
  0x22   :  { %228 = vmatpush.msrb.mxu0 %v135_v26  ;;  %247 = vmatpush.msrb.mxu1 %v938_v4  ;;  %v343_v32 = vand.u32 4294901760, %v342_v22  ;;  %v349_v38 = vand.u32 4294901760, %v348_v23  ;;  %v371_v26 = vand.u32 4294901760, %v1049_v15  ;;  %v377_v4 = vand.u32 4294901760, %v1059_v16 }
  0x23   :  { %338 = vmatpush.msrb.mxu3 %v337_v60  ;;  %285 = vmatpush.msrb.mxu2 %v967_v21  ;;  %v355_v42 = vand.u32 4294901760, %v354_v24  ;;  %v366_v43 = vsub.f32 %v1043_v13, %v365_v25  ;;  %v1089_v44 = vand.u32 4294901760, %v262_v34  ;;  %v1094_v45 = vsub.f32 %v264_v30, %v1081_v39 }
  0x24   :  { %424 = vmatpush.msra.mxu0 %v976_v27  ;;  %249 = vmatpush.msrb.mxu1 %v940_v5  ;;  %v383_v5 = vand.u32 4294901760, %v1070_v33  ;;  %v361_v47 = vand.u32 4294901760, %v360_v18  ;;  %v372_v48 = vsub.f32 %v1049_v15, %v371_v26  ;;  %v1102_v49 = vsub.f32 %v263_v31, %v1083_v40 }
  0x25   :  { %230 = vmatmul.f32.vlgmr.msrb.gmra.mxu0 %v958_v17  ;;  %344 = vmatpush.msrb.mxu3 %v343_v32  ;;  %v378_v50 = vsub.f32 %v1059_v16, %v377_v4  ;;  %v367_v51 = vand.u32 4294901760, %v366_v43  ;;  %v389_v52 = vand.u32 4294901760, %v1094_v45  ;;  %v1114_v56 = vsub.f32 %v262_v34, %v1089_v44 }
  0x26   :  { %287 = vmatpush.msrb.mxu2 %v1010_v53  ;;  %251 = vmatpush.msrb.mxu1 %v942_v6  ;;  %v1104_v6 = vand.u32 4294901760, %v261_v41  ;;  %v1116_v57 = vand.u32 4294901760, %v260_v46  ;;  %v384_v58 = vsub.f32 %v1070_v33, %v383_v5 }
  0x27   :  { %427 = vmatpush.msra.mxu0 %v979_v28  ;;  %350 = vmatpush.msrb.mxu3 %v349_v38  ;;  %v379_v60 = vand.u32 4294901760, %v378_v50  ;;  %v390_v22 = vsub.f32 %v1094_v45, %v389_v52  ;;  %v401_v23 = vand.u32 4294901760, %v1114_v56 }
  0x28   :  { %289 = vmatpush.msrb.mxu2 %v1012_v54  ;;  %253 = vmatpush.msrb.mxu1 %v947_v9  ;;  %v373_v9 = vand.u32 4294901760, %v372_v48  ;;  %v1125_v59 = vsub.f32 %v261_v41, %v1104_v6  ;;  %v1135_v24 = vsub.f32 %v260_v46, %v1116_v57  ;;  %v385_v30 = vand.u32 4294901760, %v384_v58 }
  0x29   :  { %430 = vmatpush.msra.mxu0 %v982_v29  ;;  %255 = vmatmul.f32.vlgmr.msrb.gmra.mxu1 %v958_v17  ;;  %v395_v17 = vand.u32 4294901760, %v1102_v49  ;;  %v391_v34 = vand.u32 4294901760, %v390_v22  ;;  %v402_v38 = vsub.f32 %v1114_v56, %v401_v23 }
  0x2a   :  { %356 = vmatpush.msrb.mxu3 %v355_v42  ;;  %291 = vmatpush.msrb.mxu2 %v1014_v55  ;;  %v407_v32 = vand.u32 4294901760, %v1125_v59  ;;  %v413_v18 = vand.u32 4294901760, %v1135_v24 }
  0x2b   :  { %477 = vmatpush.msra.mxu1 %v963_v19  ;;  %433 = vmatpush.msra.mxu0 %v1019_v62  ;;  %v396_v31 = vsub.f32 %v1102_v49, %v395_v17  ;;  %v403_v43 = vand.u32 4294901760, %v402_v38 }
  0x2c   :  { %362 = vmatpush.msrb.mxu3 %v361_v47  ;;  %293 = vmatpush.msrb.mxu2 %v1016_v61  ;;  %v408_v42 = vsub.f32 %v1125_v59, %v407_v32  ;;  %v414_v46 = vsub.f32 %v1135_v24, %v413_v18 }
  0x2d   :  { %479 = vmatpush.msra.mxu1 %v965_v20  ;;  %436 = vmatpush.msra.mxu0 %v1022_v63  ;;  %v397_v41 = vand.u32 4294901760, %v396_v31 }
  0x2e   :  { %368 = vmatpush.msrb.mxu3 %v367_v51  ;;  %295 = vmatpush.msrb.mxu2 %v1027_v1  ;;  %v409_v47 = vand.u32 4294901760, %v408_v42  ;;  %v415_v48 = vand.u32 4294901760, %v414_v46 }
  0x2f   :  { %481 = vmatpush.msra.mxu1 %v967_v21  ;;  %439 = vmatpush.msra.mxu0 %v1025_v0 }
  0x30   :  { %374 = vmatpush.msrb.mxu3 %v373_v9  ;;  %297 = vmatpush.msrb.mxu2 %v1032_v3 }
  0x31   :  { %483 = vmatpush.msra.mxu1 %v1010_v53  ;;  %442 = vmatpush.msra.mxu0 %v1030_v2 }
  0x32   :  { %380 = vmatpush.msrb.mxu3 %v379_v60  ;;  %299 = vmatpush.msrb.mxu2 %v1034_v7 }
  0x33   :  { %485 = vmatpush.msra.mxu1 %v1012_v54  ;;  %445 = vmatpush.msra.mxu0 %v1043_v13 }
  0x34   :  { %386 = vmatpush.msrb.mxu3 %v385_v30  ;;  %301 = vmatpush.msrb.mxu2 %v1036_v8 }
  0x35   :  { %487 = vmatpush.msra.mxu1 %v1014_v55  ;;  %448 = vmatpush.msra.mxu0 %v1049_v15  ;;  %v623_v15 = vld [vmem:[#allocation2] sm:$0x1] }
  0x36   :  { %392 = vmatpush.msrb.mxu3 %v391_v34  ;;  %303 = vmatpush.msrb.mxu2 %v1081_v39 }
  0x37   :  { %489 = vmatpush.msra.mxu1 %v1016_v61  ;;  %451 = vmatpush.msra.mxu0 %v1059_v16 }
  0x38   :  { %398 = vmatpush.msrb.mxu3 %v397_v41  ;;  %305 = vmatpush.msrb.mxu2 %v1083_v40 }
  0x39   :  { %491 = vmatpush.msra.mxu1 %v1027_v1  ;;  %454 = vmatpush.msra.mxu0 %v1070_v33 }
  0x3a   :  { %404 = vmatpush.msrb.mxu3 %v403_v43  ;;  %307 = vmatpush.msrb.mxu2 %v1089_v44 }
  0x3b   :  { %493 = vmatpush.msra.mxu1 %v1032_v3  ;;  %457 = vmatpush.msra.mxu0 %v1094_v45 }
  0x3c   :  { %410 = vmatpush.msrb.mxu3 %v409_v47  ;;  %309 = vmatpush.msrb.mxu2 %v1104_v6 }
  0x3d   :  { %495 = vmatpush.msra.mxu1 %v1034_v7  ;;  %460 = vmatpush.msra.mxu0 %v1102_v49 }
  0x3e   :  { %416 = vmatpush.msrb.mxu3 %v415_v48  ;;  %311 = vmatpush.msrb.mxu2 %v1116_v57 }
  0x3f   :  { %497 = vmatpush.msra.mxu1 %v1036_v8  ;;  %463 = vmatpush.msra.mxu0 %v1114_v56 }
  0x40   :  { %585 = vmatpush.msra.mxu3 %v963_v19  ;;  %518 = vmatpush.msra.mxu2 %v323_v35  ;;  %v803_v19 = vld [vmem:[%s1248_s2] ss:$0 sm:$0xff] }
  0x41   :  { %499 = vmatpush.msra.mxu1 %v1081_v39  ;;  %466 = vmatpush.msra.mxu0 %v1125_v59 }
  0x42   :  { %587 = vmatpush.msra.mxu3 %v965_v20  ;;  %522 = vmatpush.msra.mxu2 %v329_v36 }
  0x43   :  { %501 = vmatpush.msra.mxu1 %v1083_v40  ;;  %469 = vmatpush.msra.mxu0 %v1135_v24 }
  0x44   :  { %589 = vmatpush.msra.mxu3 %v967_v21  ;;  %526 = vmatpush.msra.mxu2 %v335_v37 }
  0x45   :  { %503 = vmatpush.msra.mxu1 %v1089_v44 }
  0x46   :  { %591 = vmatpush.msra.mxu3 %v1010_v53  ;;  %530 = vmatpush.msra.mxu2 %v341_v10 }
  0x47   :  { %505 = vmatpush.msra.mxu1 %v1104_v6 }
  0x48   :  { %593 = vmatpush.msra.mxu3 %v1012_v54  ;;  %534 = vmatpush.msra.mxu2 %v347_v11 }
  0x49   :  { %507 = vmatpush.msra.mxu1 %v1116_v57 }
  0x4a   :  { %595 = vmatpush.msra.mxu3 %v1014_v55  ;;  %538 = vmatpush.msra.mxu2 %v353_v12 }
  0x4c   :  { %597 = vmatpush.msra.mxu3 %v1016_v61  ;;  %542 = vmatpush.msra.mxu2 %v359_v14  ;;  %v887_v14 = vmov 0  }
  0x4d   :  { %802 = vset.pattern.permute.xlu0 %v887_v14 }
  0x4e   :  { %599 = vmatpush.msra.mxu3 %v1027_v1  ;;  %546 = vmatpush.msra.mxu2 %v365_v25 }
  0x4f   :  { %626 = vperm.xlu0 %802, %v623_v15  }
  0x50   :  { %601 = vmatpush.msra.mxu3 %v1032_v3  ;;  %550 = vmatpush.msra.mxu2 %v371_v26 }
  0x52   :  { %603 = vmatpush.msra.mxu3 %v1034_v7  ;;  %554 = vmatpush.msra.mxu2 %v377_v4  ;;  %v804_v7 = vld [vmem:[%s1250_s4] ss:$0 sm:$0xff]  ;;  %s888_s4 = smov [#allocation8]  }
  0x54   :  { %605 = vmatpush.msra.mxu3 %v1036_v8  ;;  %558 = vmatpush.msra.mxu2 %v383_v5  ;;  %v622_v8 = vld [vmem:[%s1251_s5] sm:$0x1]  ;;  %s783_s5 = sshll.u32 %s888_s4, 4  ;;  %s784_s5 = int_to_ptr.vmem [resolvable:$true] %s783_s5 }
  0x55   :  { %v647_v12 = vand.u32 4294901760, %v622_v8 }
  0x56   :  { %607 = vmatpush.msra.mxu3 %v1081_v39  ;;  %562 = vmatpush.msra.mxu2 %v389_v52 }
  0x57   :  { %v648_v33 = vsub.f32 %v622_v8, %v647_v12 }
  0x58   :  { %609 = vmatpush.msra.mxu3 %v1083_v40  ;;  %566 = vmatpush.msra.mxu2 %v395_v17 }
  0x5a   :  { %611 = vmatpush.msra.mxu3 %v1089_v44  ;;  %570 = vmatpush.msra.mxu2 %v401_v23  ;;  %v649_v44 = vand.u32 4294901760, %v648_v33 }
  0x5c   :  { %613 = vmatpush.msra.mxu3 %v1104_v6  ;;  %574 = vmatpush.msra.mxu2 %v407_v32  ;;  %v650_v6 = vsub.f32 %v648_v33, %v649_v44 }
  0x5e   :  { %615 = vmatpush.msra.mxu3 %v1116_v57  ;;  %578 = vmatpush.msra.mxu2 %v413_v18  ;;  %v651_v52 = vand.u32 4294901760, %v650_v6 }
  0x9a   :  { %v100_v20 = vpop.f32.mrf.mxu0 }
  0x9b   :  { %v101_v21 = vadd.f32 %v803_v19, %v100_v20 }
  0x9e   :  { %v141_v27 = vpop.f32.mrf.mxu1  ;;  %v198_v35 = vpop.f32.mrf.mxu3 }
  0x9f   :  { %v171_v28 = vpop.f32.mrf.mxu2  ;;  %v142_v29 = vadd.f32 %v141_v27, %v101_v21 }
  0xa1   :  { %v172_v36 = vadd.f32 %v171_v28, %v142_v29 }
  0xa2   :  { %v231_v37 = vpop.f32.mrf.mxu0 }
  0xa3   :  { %v199_v53 = vadd.f32 %v198_v35, %v172_v36 }
  0xa5   :  { %v232_v54 = vadd.f32 %v231_v37, %v199_v53 }
  0xa6   :  { %v256_v55 = vpop.f32.mrf.mxu1 }
  0xa7   :  { %v257_v61 = vadd.f32 %v256_v55, %v232_v54 }
  0xa9   :  { %v259_v62 = vmax.f32 %v257_v61, 0.0 }
  0xab   :  { %v312_v63 = vand.u32 4294901760, %v259_v62 }
  0xad   :  { %v313_v0 = vsub.f32 %v259_v62, %v312_v63  ;;  %418 = vmatmul.f32.vlgmr.msrb.gmra.mxu3 %v312_v63 }
  0xaf   :  { %472 = vmatmul.f32.vlgmr.msra.gmra.mxu0 %v313_v0  ;;  %v314_v1 = vand.u32 4294901760, %v313_v0 }
  0xb1   :  { %511 = vmatmul.f32.vlgmr.msra.gmra.mxu1 %v314_v1  ;;  %v315_v2 = vsub.f32 %v313_v0, %v314_v1 }
  0xb3   :  { %v316_v3 = vand.u32 4294901760, %v315_v2 }
  0xb5   :  { %317 = vmatmul.f32.vlgmr.msrb.gmra.mxu2 %v316_v3  ;;  %617 = vmatmul.f32.vlgmr.msra.gmra.mxu3 %v312_v63 }
  0xbd   :  { %580 = vmatmul.f32.vlgmr.msra.gmra.mxu2 %v312_v63 }
  0xc1   :  { %v627_v59 = vpop.permute.xlu0 %626 }
  0xc2   :  { %v629_v60 = vperm.slane %v627_v59, 0 }
 0x12c   :  { %v473_v25 = vpop.f32.mrf.mxu0 }
 0x12e   :  { %v512_v4 = vpop.f32.mrf.mxu1 }
 0x130   :  { %v419_v10 = vpop.f32.mrf.mxu3 }
 0x138   :  { %v318_v11 = vpop.f32.mrf.mxu2  ;;  %v618_v45 = vpop.f32.mrf.mxu3 }
 0x139   :  { %v319_v13 = vadd.f32 %v804_v7, %v318_v11 }
 0x13b   :  { %v420_v16 = vadd.f32 %v419_v10, %v319_v13 }
 0x13d   :  { %v474_v26 = vadd.f32 %v473_v25, %v420_v16 }
 0x13f   :  { %v513_v39 = vadd.f32 %v512_v4, %v474_v26 }
 0x140   :  { %v581_v40 = vpop.f32.mrf.mxu2 }
 0x141   :  { %v582_v5 = vadd.f32 %v581_v40, %v513_v39 }
 0x143   :  { %v619_v49 = vadd.f32 %v618_v45, %v582_v5 }
 0x145   :  { %v621_v50 = vmax.f32 %v619_v49, 0.0 }
 0x147   :  { %v645_v51 = vand.u32 4294901760, %v621_v50 }
 0x149   :  { %v672_v56 = vsub.f32 %v621_v50, %v645_v51  ;;  %646 = vmatpush.xpose.msrb.mxu0 %v645_v51 }
 0x14b   :  { %v673_v57 = vand.u32 4294901760, %v672_v56 }
 0x14c   :  { %652 = vmatmul.f32.vlgmr.msrb.gmra.mxu0 %v651_v52 }
 0x14d   :  { %699 = vmatpush.xpose.msra.mxu0 %v672_v56  ;;  %v674_v9 = vsub.f32 %v672_v56, %v673_v57 }
 0x14f   :  { %v675_v58 = vand.u32 4294901760, %v674_v9 }
 0x151   :  { %748 = vmatpush.xpose.msrb.mxu0 %v673_v57  ;;  %676 = vmatpush.xpose.msrb.mxu1 %v675_v58 }
 0x154   :  { %678 = vmatmul.f32.vlgmr.msrb.gmra.mxu1 %v647_v12  ;;  %702 = vmatmul.f32.vlgmr.msra.gmra.mxu0 %v648_v33 }
 0x155   :  { %722 = vmatpush.xpose.msra.mxu1 %v645_v51 }
 0x159   :  { %770 = vmatpush.xpose.msrb.mxu1 %v645_v51 }
 0x15c   :  { %726 = vmatmul.f32.vlgmr.msra.gmra.mxu1 %v649_v44  ;;  %750 = vmatmul.f32.vlgmr.msrb.gmra.mxu0 %v647_v12 }
 0x164   :  { %772 = vmatmul.f32.vlgmr.msrb.gmra.mxu1 %v647_v12 }
 0x1c9   :  { %v653_v17 = vpop.f32.mrf.mxu0 }
 0x1ca   :  { %v654_v23 = vadd.f32 %v653_v17, %v629_v60 }
 0x1d1   :  { %v679_v22 = vpop.f32.mrf.mxu1  ;;  %v703_v24 = vpop.f32.mrf.mxu0 }
 0x1d2   :  { %v680_v30 = vadd.f32 %v679_v22, %v654_v23 }
 0x1d4   :  { %v704_v32 = vadd.f32 %v703_v24, %v680_v30 }
 0x1d9   :  { %v727_v31 = vpop.f32.mrf.mxu1  ;;  %v751_v38 = vpop.f32.mrf.mxu0 }
 0x1da   :  { %v728_v34 = vadd.f32 %v727_v31, %v704_v32 }
 0x1dc   :  { %v752_v18 = vadd.f32 %v751_v38, %v728_v34 }
 0x1e1   :  { %v773_v41 = vpop.f32.mrf.mxu1 }
 0x1e2   :  { %v774_v42 = vadd.f32 %v773_v41, %v752_v18 }
 0x1e4   :  { %777 = vst.msk [vmem:[#allocation8] sm:$0x1] %vm776_vm1, %v774_v42 }
 0x1e5   :  { %788 = dma.vmem_to_hbm [thread:$0]  %s784_s5, 16, %s786_s20, [#allocation5]  }
 0x1e6   :  { %881 = dma.done.wait [#allocation5], 16  }
 0x1e7   :  { %882 = vsyncadd [#allocation5], 4294967280 }
 0x1e8   :  { %793 = vsyncpa [#allocation4], 1 }
 0x1e9   :  { %794 = vsyncpa [#allocation7], 1 }
 0x1ea   :  { %795 = vsyncpa [#allocation5], 1 }

</bundles_post_ra>
